<compile_context>
chip_gen: v5e
topology: v5e:2x2
jax: 0.10.0
libtpu: 0.0.40
codegen_flags: <defaults>
</compile_context>

<pallas_src>
import jax
import jax.numpy as jnp
from jax.experimental import pallas as pl
from jax.experimental.pallas import tpu as pltpu


def _round_up(x, m):
    return ((x + m - 1) // m) * m


def _logistic_kernel(x_ref, w_ref, b_ref, o_ref):
    # x_ref: (TB, F_pad), w_ref: (F_pad, H_pad), b_ref: (1, H_pad), o_ref: (TB, H_pad)
    # MXU matmul, contracting on the last axis of x (weight already (F, H)).
    val = jnp.dot(x_ref[...], w_ref[...],
                  preferred_element_type=jnp.float32) + b_ref[...]
    # sigmoid(v) = 1 / (1 + exp(-v)): exp -> EUP, approx reciprocal -> EUP vrcp.
    e = jnp.exp(-val)
    o_ref[...] = pl.reciprocal(1.0 + e, approx=True).astype(o_ref.dtype)


def logistic_vector(x, weight, bias, *, block_b=512):
    """Forward pass of LogisticVector: sigmoid(x @ weight.T + bias).squeeze().

    x:      (B, n_feature) float32
    weight: (n_hidden, n_feature) float32   (PyTorch nn.Linear layout)
    bias:   (n_hidden,) float32
    """
    B, F = x.shape
    H = weight.shape[0]

    # Pad: feature (contraction) and hidden (lane) dims to multiples of 128,
    # batch to a sublane-aligned tile.  Zero padding does not change the math.
    F_pad = _round_up(F, 128)
    H_pad = _round_up(H, 128)
    TB = min(block_b, _round_up(B, 8))
    B_pad = _round_up(B, TB)
    n_b = B_pad // TB

    x_p = jnp.pad(x, ((0, B_pad - B), (0, F_pad - F)))
    # Pre-transpose weight to (F, H) in the wrapper (free layout plumbing).
    w_p = jnp.pad(weight.T, ((0, F_pad - F), (0, H_pad - H)))
    b_p = jnp.pad(bias.reshape(1, H), ((0, 0), (0, H_pad - H)))

    out = pl.pallas_call(
        _logistic_kernel,
        out_shape=jax.ShapeDtypeStruct((B_pad, H_pad), jnp.float32),
        grid=(n_b,),
        in_specs=[
            pl.BlockSpec((TB, F_pad), lambda i: (i, 0),
                         memory_space=pltpu.MemorySpace.VMEM),
            pl.BlockSpec((F_pad, H_pad), lambda i: (0, 0),
                         memory_space=pltpu.MemorySpace.VMEM),
            pl.BlockSpec((1, H_pad), lambda i: (0, 0),
                         memory_space=pltpu.MemorySpace.VMEM),
        ],
        out_specs=pl.BlockSpec((TB, H_pad), lambda i: (i, 0),
                               memory_space=pltpu.MemorySpace.VMEM),
        compiler_params=pltpu.CompilerParams(
            dimension_semantics=("parallel",)),
        cost_estimate=pl.CostEstimate(
            flops=2 * B_pad * F_pad * H_pad,
            transcendentals=B_pad * H_pad,
            bytes_accessed=4 * (B_pad * F_pad + F_pad * H_pad
                                + H_pad + B_pad * H_pad)),
    )(x_p, w_p, b_p)

    # Strip padding, then mimic PyTorch .squeeze() (drop all size-1 dims).
    return jnp.squeeze(out[:B, :H])


if __name__ == "__main__":
    key = jax.random.PRNGKey(0)
    kx, kw, kb = jax.random.split(key, 3)

    # Small shapes consistent with the module: batch=8, n_feature=32, n_hidden=16
    B, n_feature, n_hidden = 8, 32, 16

    x = jax.random.normal(kx, (B, n_feature), dtype=jnp.float32)

    # Deterministic parameter init mimicking PyTorch Linear default (uniform +/- 1/sqrt(fan_in))
    bound = 1.0 / (n_feature ** 0.5)
    weight = jax.random.uniform(kw, (n_hidden, n_feature), dtype=jnp.float32,
                                minval=-bound, maxval=bound)
    bias = jax.random.uniform(kb, (n_hidden,), dtype=jnp.float32,
                              minval=-bound, maxval=bound)

    out = logistic_vector(x, weight, bias)
    out = jax.block_until_ready(out)

    # Cross-check against plain JAX reference (approx reciprocal -> relaxed tol).
    ref = jnp.squeeze(jax.nn.sigmoid(x @ weight.T + bias))
    assert out.shape == ref.shape, (out.shape, ref.shape)
    assert jnp.allclose(out, ref, atol=2e-3, rtol=2e-3), \
        float(jnp.max(jnp.abs(out - ref)))

    print("KERNEL_OK")
</pallas_src>

<mosaic_0001>
module attributes {stable_mosaic.version = 11 : i64} {
  func.func @_logistic_kernel(%arg0: i32, %arg1: memref<8x128xf32, #tpu.memory_space<vmem>>, %arg2: memref<128x128xf32, #tpu.memory_space<vmem>>, %arg3: memref<1x128xf32, #tpu.memory_space<vmem>>, %arg4: memref<8x128xf32, #tpu.memory_space<vmem>>) attributes {dimension_semantics = [#tpu.dimension_semantics<parallel>], iteration_bounds = array<i64: 1>, scalar_prefetch = 0 : i64, scratch_operands = 0 : i64, tpu.core_type = #tpu.core_type<tc>, window_params = [{transform_indices = @transform_0, window_bounds = array<i64: 8, 128>}, {pipeline_mode = #tpu.pipeline_mode<synchronous>, transform_indices = @transform_1, window_bounds = array<i64: 128, 128>}, {pipeline_mode = #tpu.pipeline_mode<synchronous>, transform_indices = @transform_2, window_bounds = array<i64: 1, 128>}, {transform_indices = @transform_3, window_bounds = array<i64: 8, 128>}]} {
    %c0 = arith.constant 0 : index
    %c0_0 = arith.constant 0 : index
    %0 = vector.load %arg1[%c0, %c0_0] : memref<8x128xf32, #tpu.memory_space<vmem>>, vector<8x128xf32>
    %c0_1 = arith.constant 0 : index
    %c0_2 = arith.constant 0 : index
    %1 = vector.load %arg2[%c0_1, %c0_2] : memref<128x128xf32, #tpu.memory_space<vmem>>, vector<128x128xf32>
    %cst = arith.constant dense<0.000000e+00> : vector<8x128xf32>
    %2 = tpu.matmul %0, %1, %cst {dimension_numbers = #tpu.dot_dimension_numbers<[1], [0], [0], [1], [0, 0, 1, 1], [], []>} : vector<8x128xf32>, vector<128x128xf32>, vector<8x128xf32> -> vector<8x128xf32>
    %c0_3 = arith.constant 0 : index
    %c0_4 = arith.constant 0 : index
    %3 = vector.load %arg3[%c0_3, %c0_4] : memref<1x128xf32, #tpu.memory_space<vmem>>, vector<1x128xf32>
    %4 = vector.broadcast %3 : vector<1x128xf32> to vector<8x128xf32>
    %5 = arith.addf %2, %4 : vector<8x128xf32>
    %cst_5 = arith.constant 0.000000e+00 : f32
    %6 = vector.broadcast %cst_5 : f32 to vector<8x128xf32>
    %7 = arith.subf %6, %5 : vector<8x128xf32>
    %8 = math.exp %7 : vector<8x128xf32>
    %cst_6 = arith.constant 1.000000e+00 : f32
    %9 = vector.broadcast %cst_6 : f32 to vector<8x128xf32>
    %10 = arith.addf %9, %8 : vector<8x128xf32>
    %11 = tpu.reciprocal %10 {approx = true} : vector<8x128xf32> -> vector<8x128xf32>
    %c0_7 = arith.constant 0 : index
    %c0_8 = arith.constant 0 : index
    %12 = vector.load %arg4[%c0_7, %c0_8] : memref<8x128xf32, #tpu.memory_space<vmem>>, vector<8x128xf32>
    tpu.vector_store %arg4[%c0_7, %c0_8], %11 {strides = array<i32>} : memref<8x128xf32, #tpu.memory_space<vmem>>, vector<8x128xf32>,
    return
  }
  func.func @transform_0(%arg0: i32) -> (i32, i32) {
    %c0_i32 = arith.constant 0 : i32
    %c0_i32_0 = arith.constant 0 : i32
    return %arg0, %c0_i32 : i32, i32
  }
  func.func @transform_1(%arg0: i32) -> (i32, i32) {
    %c0_i32 = arith.constant 0 : i32
    %c0_i32_0 = arith.constant 0 : i32
    %c0_i32_1 = arith.constant 0 : i32
    return %c0_i32, %c0_i32_0 : i32, i32
  }
  func.func @transform_2(%arg0: i32) -> (i32, i32) {
    %c0_i32 = arith.constant 0 : i32
    %c0_i32_0 = arith.constant 0 : i32
    %c0_i32_1 = arith.constant 0 : i32
    return %c0_i32, %c0_i32_0 : i32, i32
  }
  func.func @transform_3(%arg0: i32) -> (i32, i32) {
    %c0_i32 = arith.constant 0 : i32
    %c0_i32_0 = arith.constant 0 : i32
    return %arg0, %c0_i32 : i32, i32
  }
}

</mosaic_0001>

<bundles_post_ra>
// kernel: tpu_custom_call.1
= control target key start
LH: loop header
LB: loop body
LE: loop exit
PB: predicated region body
PF: predicated region fallthrough
CT: control target
= control target key end

     0   :  { %8 = vsyncpa [#allocation3], 0  ;;  %s235_s0 = inlined_call_operand.hbm [shape: f32[8,128], index: 0, kind: input, shape index: {}]   ;;  %s236_s1 = inlined_call_operand.hbm [shape: f32[128,128], index: 1, kind: input, shape index: {}]   ;;  %s237_s2 = inlined_call_operand.vmem [shape: f32[1,128], index: 2, kind: input, shape index: {}]   ;;  %s238_s3 = inlined_call_operand.hbm [shape: f32[8,128], index: 3, kind: output, shape index: {}]  }
   0x1   :  { %9 = vsyncpa [#allocation6], 0 }
   0x2   :  { %10 = vsyncpa [#allocation4], 0  ;;  %s16_s14 = sshll.u32 %s235_s0, 4  ;;  %s198_s15 = smov [#allocation2]   ;;  %s17_s14 = int_to_ptr.hbm [resolvable:$true] %s16_s14 }
   0x3   :  { %s18_s16 = sshll.u32 %s198_s15, 4  ;;  %s26_s19 = sshll.u32 %s236_s1, 4  ;;  %s19_s16 = int_to_ptr.vmem [resolvable:$true] %s18_s16  ;;  %s27_s19 = int_to_ptr.hbm [resolvable:$true] %s26_s19 }
   0x4   :  { %21 = dma.hbm_to_vmem [thread:$0]  %s17_s14, 128, %s19_s16, [#allocation3]  }
   0x5   :  { %s199_s20 = smov [#allocation5]   ;;  %s200_s22 = smov 128  }
   0x6   :  { %s28_s21 = sshll.u32 %s199_s20, 4  ;;  %s201_s23 = smov 8   ;;  %s29_s21 = int_to_ptr.vmem [resolvable:$true] %s28_s21 }
   0x7   :  { %34 = dma.hbm_to_vmem [thread:$0]  %s27_s19, 2048, %s29_s21, [#allocation6], %s200_s22, %s200_s22, %s201_s23  }
   0x8   :  { %192 = dma.done.wait [#allocation3], 128  }
   0x9   :  { %193 = vsyncadd [#allocation3], 4294967168 }
   0xa   :  { %194 = dma.done.wait [#allocation6], 2048  }
   0xb   :  { %195 = vsyncadd [#allocation6], 4294965248  ;;  %v61_v0 = vld [vmem:[#allocation5 + $0x78] sm:$0xff]  ;;  %v60_v1 = vld [vmem:[#allocation5 + $0x70] sm:$0xff]  ;;  %s202_s24 = smov [#allocation7]   ;;  %s99_s28 = sshll.u32 %s238_s3, 4  ;;  %s100_s28 = int_to_ptr.hbm [resolvable:$true] %s99_s28 }
   0xc   :  { %66 = vmatpush.msra.mxu0 %v61_v0  ;;  %v59_v2 = vld [vmem:[#allocation5 + $0x68] sm:$0xff]  ;;  %v58_v3 = vld [vmem:[#allocation5 + $0x60] sm:$0xff]  ;;  %v57_v4 = vld [vmem:[#allocation5 + $0x58] sm:$0xff]  ;;  %s97_s25 = sshll.u32 %s202_s24, 4  ;;  %s98_s25 = int_to_ptr.vmem [resolvable:$true] %s97_s25 }
   0xd   :  { %v56_v5 = vld [vmem:[#allocation5 + $0x50] sm:$0xff]  ;;  %v55_v6 = vld [vmem:[#allocation5 + $0x48] sm:$0xff]  ;;  %v54_v7 = vld [vmem:[#allocation5 + $0x40] sm:$0xff] }
   0xe   :  { %67 = vmatpush.msra.mxu0 %v60_v1  ;;  %v53_v8 = vld [vmem:[#allocation5 + $0x38] sm:$0xff]  ;;  %v52_v9 = vld [vmem:[#allocation5 + $0x30] sm:$0xff]  ;;  %v51_v10 = vld [vmem:[#allocation5 + $0x28] sm:$0xff] }
   0xf   :  { %v50_v11 = vld [vmem:[#allocation5 + $0x20] sm:$0xff]  ;;  %v49_v12 = vld [vmem:[#allocation5 + $0x18] sm:$0xff]  ;;  %v48_v13 = vld [vmem:[#allocation5 + $0x10] sm:$0xff] }
  0x10   :  { %68 = vmatpush.msra.mxu0 %v59_v2  ;;  %v47_v14 = vld [vmem:[#allocation5 + $0x8] sm:$0xff]  ;;  %v46_v15 = vld [vmem:[#allocation5] sm:$0xff]  ;;  %v45_v16 = vld [vmem:[#allocation2] sm:$0xff] }
  0x11   :  { %v115_v17 = vld [vmem:[%s237_s2] ss:$0 sm:$0xff] }
  0x12   :  { %69 = vmatpush.msra.mxu0 %v58_v3 }
  0x14   :  { %70 = vmatpush.msra.mxu0 %v57_v4 }
  0x16   :  { %71 = vmatpush.msra.mxu0 %v56_v5 }
  0x18   :  { %72 = vmatpush.msra.mxu0 %v55_v6 }
  0x1a   :  { %73 = vmatpush.msra.mxu0 %v54_v7 }
  0x1c   :  { %74 = vmatpush.msra.mxu0 %v53_v8 }
  0x1e   :  { %75 = vmatpush.msra.mxu0 %v52_v9 }
  0x20   :  { %76 = vmatpush.msra.mxu0 %v51_v10 }
  0x22   :  { %77 = vmatpush.msra.mxu0 %v50_v11 }
  0x24   :  { %78 = vmatpush.msra.mxu0 %v49_v12 }
  0x26   :  { %79 = vmatpush.msra.mxu0 %v48_v13 }
  0x28   :  { %80 = vmatpush.msra.mxu0 %v47_v14 }
  0x2a   :  { %81 = vmatpush.msra.mxu0 %v46_v15 }
  0x2b   :  { %82 = vmatmul.f32.vlgmr.msra.gmra.mxu0 %v45_v16 }
  0xa8   :  { %v83_v18 = vpop.f32.mrf.mxu0 }
  0xa9   :  { %v84_v19 = vadd.f32 %v115_v17, %v83_v18 }
  0xab   :  { %v86_v20 = vsub.f32 0.0, %v84_v19 }
  0xad   :  { %v87_v21 = vmul.f32 1.442695, %v86_v20 }
  0xaf   :  { %116 = vpow2.f32 %v87_v21 }
  0xb5   :  { %v117_v22 = vpop.eup %116 }
  0xb6   :  { %v89_v23 = vadd.f32 1.0, %v117_v22 }
  0xb8   :  { %118 = vrcp.f32 %v89_v23 }
  0xbe   :  { %v119_v24 = vpop.eup %118 }
  0xbf   :  { %91 = vst [vmem:[#allocation7] sm:$0xff] %v119_v24 }
  0xc0   :  { %102 = dma.vmem_to_hbm [thread:$0]  %s98_s25, 128, %s100_s28, [#allocation4]  }
  0xc1   :  { %196 = dma.done.wait [#allocation4], 128  }
  0xc2   :  { %197 = vsyncadd [#allocation4], 4294967168 }
  0xc3   :  { %107 = vsyncpa [#allocation3], 1 }
  0xc4   :  { %108 = vsyncpa [#allocation6], 1 }
  0xc5   :  { %109 = vsyncpa [#allocation4], 1 }

</bundles_post_ra>
